<compile_context>
chip_gen: v7x
topology: tpu7x:2x2x1
jax: 0.10.0
libtpu: 0.0.40
codegen_flags: <defaults>
</compile_context>

<pallas_src>
import jax
import jax.numpy as jnp
from jax import lax
from jax.experimental import pallas as pl
from jax.experimental.pallas import tpu as pltpu


def _round_up(x, m):
    return (x + m - 1) // m * m


def _tpu_budget():
    """Per-generation (vmem_limit_bytes, default edge tile cap)."""
    kind = ""
    try:
        kind = jax.devices()[0].device_kind.lower()
    except Exception:
        pass
    if "v7" in kind or "7x" in kind:
        return 48 * 1024 * 1024, 512          # 64 MiB physical per TC -> headroom
    if "v5" in kind or "v6" in kind:
        return 100 * 1024 * 1024, 1024        # 128 MiB physical VMEM
    return 48 * 1024 * 1024, 512              # conservative default


# ----------------------------- Pallas kernel -----------------------------

def _score_predictor_kernel(src_ref, dst_ref, e_ref,
                            xs_ref, xd_ref,
                            w1e_ref, b1_ref, w2_ref, b2_ref, w3_ref, b3_ref,
                            out_ref):
    dot = lambda a, b: jnp.dot(a, b, preferred_element_type=jnp.float32)
    tE = src_ref.shape[0]
    N = xs_ref.shape[0]

    # In-kernel one-hot gather matrices (bf16, exact): O(E) index bytes from HBM
    # instead of an O(E*N) one-hot stream.  VPU compares are cheap next to MXU.
    node_iota = lax.broadcasted_iota(jnp.int32, (tE, N), 1)
    oh_src = (src_ref[...] == node_iota).astype(jnp.bfloat16)    # (tE, N)
    oh_dst = (dst_ref[...] == node_iota).astype(jnp.bfloat16)    # (tE, N)

    # Gather the hoisted node projections of W1 with two bf16 MXU matmuls
    # (f32 accumulation):  h = (x @ W1_src)[src] + (x @ W1_dst)[dst]
    h = dot(oh_src, xs_ref[...]) + dot(oh_dst, xd_ref[...])      # (tE, hes) f32

    # Edge-feature part of W1 + bias, then the MLP (dropout p=0 -> identity).
    h = h + dot(e_ref[...], w1e_ref[...]) + b1_ref[...]
    h = jnp.maximum(h, 0.0).astype(jnp.bfloat16)
    h = jnp.maximum(dot(h, w2_ref[...]) + b2_ref[...], 0.0).astype(jnp.bfloat16)
    out_ref[...] = dot(h, w3_ref[...]) + b3_ref[...]             # (tE, c) f32


# ----------------------------- wrapper -----------------------------

def score_predictor(x, e, src, dst, params, *, edge_tile=None):
    """Pallas ScorePredictor forward.  Returns (E, nr_classes) f32 scores."""
    N, D = x.shape
    E = e.shape[0]
    hes = params['W1s'].shape[1]
    mid = params['W2'].shape[1]
    c = params['W3'].shape[1]

    # Hoist the node-side projection of W1 out of the kernel (done exactly once,
    # instead of once per edge tile).  bf16 keeps the resident operands tiny.
    xs_proj = (x @ params['W1s']).astype(jnp.bfloat16)            # (N, hes)
    xd_proj = (x @ params['W1d']).astype(jnp.bfloat16)            # (N, hes)

    # bf16 streams / weights (intentional bounded precision trade-off).
    e_bf = e.astype(jnp.bfloat16)
    w1e = params['W1e'].astype(jnp.bfloat16)
    w2 = params['W2'].astype(jnp.bfloat16)
    w3 = params['W3'].astype(jnp.bfloat16)

    vmem_limit, tile_cap = _tpu_budget()
    if edge_tile is not None:
        tile_cap = edge_tile

    # Edge tiling: rows multiple of 8, and >= 2 grid steps whenever possible so
    # the "parallel" edge axis actually feeds both v7x TensorCores.
    tE = min(tile_cap, max(8, _round_up(pl.cdiv(E, 2), 8)))
    E_pad = _round_up(E, tE)

    src_i = jnp.pad(src.astype(jnp.int32).reshape(E, 1), ((0, E_pad - E), (0, 0)))
    dst_i = jnp.pad(dst.astype(jnp.int32).reshape(E, 1), ((0, E_pad - E), (0, 0)))
    e_bf = jnp.pad(e_bf, ((0, E_pad - E), (0, 0)))

    const = lambda i: (0, 0)
    edge_map = lambda i: (i, 0)

    def make_in_specs(single_buffer):
        # Grid-invariant operands: single-buffer to halve their VMEM footprint.
        kw = dict(pipeline_mode=pl.Buffered(1)) if single_buffer else {}
        return [
            pl.BlockSpec((tE, 1), edge_map),            # src indices (tiled)
            pl.BlockSpec((tE, 1), edge_map),            # dst indices (tiled)
            pl.BlockSpec((tE, D), edge_map),            # e (bf16, tiled)
            pl.BlockSpec((N, hes), const, **kw),        # x @ W1_src (bf16)
            pl.BlockSpec((N, hes), const, **kw),        # x @ W1_dst (bf16)
            pl.BlockSpec((D, hes), const, **kw),        # W1 (edge rows, bf16)
            pl.BlockSpec((1, hes), const, **kw),        # b1
            pl.BlockSpec((hes, mid), const, **kw),      # W2 (bf16)
            pl.BlockSpec((1, mid), const, **kw),        # b2
            pl.BlockSpec((mid, c), const, **kw),        # W3 (bf16)
            pl.BlockSpec((1, c), const, **kw),          # b3
        ]

    def run(single_buffer):
        return pl.pallas_call(
            _score_predictor_kernel,
            out_shape=jax.ShapeDtypeStruct((E_pad, c), jnp.float32),
            grid=(E_pad // tE,),
            in_specs=make_in_specs(single_buffer),
            out_specs=pl.BlockSpec((tE, c), edge_map),
            compiler_params=pltpu.CompilerParams(
                dimension_semantics=("parallel",),      # shard edge tiles on v7x
                vmem_limit_bytes=vmem_limit,            # per-generation budget
            ),
        )(src_i, dst_i, e_bf, xs_proj, xd_proj,
          w1e, params['b1'], w2, params['b2'], w3, params['b3'])

    try:
        out = run(single_buffer=True)
    except Exception:
        # Fallback for jax versions without BlockSpec pipeline_mode support.
        out = run(single_buffer=False)

    return out[:E, :c]


# ----------------------------- parameter init -----------------------------

def init_linear(key, in_f, out_f):
    k1, k2 = jax.random.split(key)
    bound = 1.0 / jnp.sqrt(jnp.float32(in_f))
    w = jax.random.uniform(k1, (in_f, out_f), minval=-bound, maxval=bound, dtype=jnp.float32)
    b = jax.random.uniform(k2, (1, out_f), minval=-bound, maxval=bound, dtype=jnp.float32)
    return w, b


def init_score_predictor_params(key, in_features, hidden_edge_scores, nr_classes):
    k1, k2, k3 = jax.random.split(key, 3)
    w1, b1 = init_linear(k1, 3 * in_features, hidden_edge_scores)   # (3D, hes)
    w2, b2 = init_linear(k2, hidden_edge_scores, 32)
    w3, b3 = init_linear(k3, 32, nr_classes)
    return {
        'W1s': w1[:in_features],                    # rows matching x_src in the concat
        'W1d': w1[in_features:2 * in_features],     # rows matching x_dst
        'W1e': w1[2 * in_features:],                # rows matching e
        'b1': b1, 'W2': w2, 'b2': b2, 'W3': w3, 'b3': b3,
    }


# ----------------------------- pure-JAX reference -----------------------------

def score_predictor_reference(x, e, src, dst, p):
    z = jnp.concatenate([x[src], x[dst], e], axis=1)
    w1 = jnp.concatenate([p['W1s'], p['W1d'], p['W1e']], axis=0)
    h = jnp.maximum(z @ w1 + p['b1'], 0.0)
    h = jnp.maximum(h @ p['W2'] + p['b2'], 0.0)
    return h @ p['W3'] + p['b3']


# ----------------------------- main -----------------------------

if __name__ == "__main__":
    key = jax.random.PRNGKey(0)

    # module config
    in_features = 32          # per-node / per-edge feature dim from the GNN
    hidden_edge_scores = 16
    nr_classes = 1

    # small synthetic graph
    N = 16                    # nodes
    E = 64                    # edges

    k_src, k_dst, k_x, k_e, k_p = jax.random.split(key, 5)
    src = jax.random.randint(k_src, (E,), 0, N)
    dst = jax.random.randint(k_dst, (E,), 0, N)
    x = jax.random.normal(k_x, (N, in_features), dtype=jnp.float32)
    e = jax.random.normal(k_e, (E, in_features), dtype=jnp.float32)

    params = init_score_predictor_params(k_p, in_features, hidden_edge_scores, nr_classes)

    scores = score_predictor(x, e, src, dst, params)
    scores = jax.block_until_ready(scores)

    assert scores.shape == (E, nr_classes)
    ref = score_predictor_reference(x, e, src, dst, params)
    # All matmul operands (one-hot gather, node projections, e, W1e, W2, W3 and
    # the intermediate activations) are intentionally bf16 with f32 accumulation
    # -> bounded ~1% relative error vs. the f32 reference; tolerance reflects that.
    assert bool(jnp.all(jnp.isfinite(scores)))
    assert bool(jnp.allclose(scores, ref, atol=3e-2, rtol=3e-2)), "mismatch vs reference"

    print("KERNEL_OK")
</pallas_src>

<mosaic_0001>
module attributes {stable_mosaic.version = 11 : i64} {
  func.func @_score_predictor_kernel(%arg0: i32, %arg1: memref<32x1xi32, #tpu.memory_space<vmem>>, %arg2: memref<32x1xi32, #tpu.memory_space<vmem>>, %arg3: memref<32x32xbf16, #tpu.memory_space<vmem>>, %arg4: memref<16x16xbf16, #tpu.memory_space<vmem>>, %arg5: memref<16x16xbf16, #tpu.memory_space<vmem>>, %arg6: memref<32x16xbf16, #tpu.memory_space<vmem>>, %arg7: memref<1x16xf32, #tpu.memory_space<vmem>>, %arg8: memref<16x32xbf16, #tpu.memory_space<vmem>>, %arg9: memref<1x32xf32, #tpu.memory_space<vmem>>, %arg10: memref<32x1xbf16, #tpu.memory_space<vmem>>, %arg11: memref<1x1xf32, #tpu.memory_space<vmem>>, %arg12: memref<32x1xf32, #tpu.memory_space<vmem>>) attributes {dimension_semantics = [#tpu.dimension_semantics<parallel>], iteration_bounds = array<i64: 2>, scalar_prefetch = 0 : i64, scratch_operands = 0 : i64, tpu.core_type = #tpu.core_type<tc>, window_params = [{transform_indices = @transform_0, window_bounds = array<i64: 32, 1>}, {transform_indices = @transform_1, window_bounds = array<i64: 32, 1>}, {transform_indices = @transform_2, window_bounds = array<i64: 32, 32>}, {pipeline_mode = #tpu.pipeline_mode<synchronous>, transform_indices = @transform_3, window_bounds = array<i64: 16, 16>}, {pipeline_mode = #tpu.pipeline_mode<synchronous>, transform_indices = @transform_4, window_bounds = array<i64: 16, 16>}, {pipeline_mode = #tpu.pipeline_mode<synchronous>, transform_indices = @transform_5, window_bounds = array<i64: 32, 16>}, {pipeline_mode = #tpu.pipeline_mode<synchronous>, transform_indices = @transform_6, window_bounds = array<i64: 1, 16>}, {pipeline_mode = #tpu.pipeline_mode<synchronous>, transform_indices = @transform_7, window_bounds = array<i64: 16, 32>}, {pipeline_mode = #tpu.pipeline_mode<synchronous>, transform_indices = @transform_8, window_bounds = array<i64: 1, 32>}, {pipeline_mode = #tpu.pipeline_mode<synchronous>, transform_indices = @transform_9, window_bounds = array<i64: 32, 1>}, {pipeline_mode = #tpu.pipeline_mode<synchronous>, transform_indices = @transform_10, window_bounds = array<i64: 1, 1>}, {transform_indices = @transform_11, window_bounds = array<i64: 32, 1>}]} {
    %0 = tpu.iota {dimensions = array<i32: 1>} : vector<32x16xi32>
    %c0 = arith.constant 0 : index
    %c0_0 = arith.constant 0 : index
    %1 = vector.load %arg1[%c0, %c0_0] : memref<32x1xi32, #tpu.memory_space<vmem>>, vector<32x1xi32>
    %2 = vector.broadcast %1 : vector<32x1xi32> to vector<32x16xi32>
    %3 = arith.cmpi eq, %2, %0 : vector<32x16xi32>
    %4 = arith.extui %3 : vector<32x16xi1> to vector<32x16xi32>
    %5 = arith.sitofp %4 : vector<32x16xi32> to vector<32x16xf32>
    %6 = arith.truncf %5 : vector<32x16xf32> to vector<32x16xbf16>
    %c0_1 = arith.constant 0 : index
    %c0_2 = arith.constant 0 : index
    %7 = vector.load %arg2[%c0_1, %c0_2] : memref<32x1xi32, #tpu.memory_space<vmem>>, vector<32x1xi32>
    %8 = vector.broadcast %7 : vector<32x1xi32> to vector<32x16xi32>
    %9 = arith.cmpi eq, %8, %0 : vector<32x16xi32>
    %10 = arith.extui %9 : vector<32x16xi1> to vector<32x16xi32>
    %11 = arith.sitofp %10 : vector<32x16xi32> to vector<32x16xf32>
    %12 = arith.truncf %11 : vector<32x16xf32> to vector<32x16xbf16>
    %c0_3 = arith.constant 0 : index
    %c0_4 = arith.constant 0 : index
    %13 = vector.load %arg4[%c0_3, %c0_4] : memref<16x16xbf16, #tpu.memory_space<vmem>>, vector<16x16xbf16>
    %cst = arith.constant dense<0.000000e+00> : vector<32x16xf32>
    %14 = tpu.matmul %6, %13, %cst {dimension_numbers = #tpu.dot_dimension_numbers<[1], [0], [0], [1], [0, 0, 1, 1], [], []>} : vector<32x16xbf16>, vector<16x16xbf16>, vector<32x16xf32> -> vector<32x16xf32>
    %c0_5 = arith.constant 0 : index
    %c0_6 = arith.constant 0 : index
    %15 = vector.load %arg5[%c0_5, %c0_6] : memref<16x16xbf16, #tpu.memory_space<vmem>>, vector<16x16xbf16>
    %cst_7 = arith.constant dense<0.000000e+00> : vector<32x16xf32>
    %16 = tpu.matmul %12, %15, %cst_7 {dimension_numbers = #tpu.dot_dimension_numbers<[1], [0], [0], [1], [0, 0, 1, 1], [], []>} : vector<32x16xbf16>, vector<16x16xbf16>, vector<32x16xf32> -> vector<32x16xf32>
    %17 = arith.addf %14, %16 : vector<32x16xf32>
    %c0_8 = arith.constant 0 : index
    %c0_9 = arith.constant 0 : index
    %18 = vector.load %arg3[%c0_8, %c0_9] : memref<32x32xbf16, #tpu.memory_space<vmem>>, vector<32x32xbf16>
    %c0_10 = arith.constant 0 : index
    %c0_11 = arith.constant 0 : index
    %19 = vector.load %arg6[%c0_10, %c0_11] : memref<32x16xbf16, #tpu.memory_space<vmem>>, vector<32x16xbf16>
    %cst_12 = arith.constant dense<0.000000e+00> : vector<32x16xf32>
    %20 = tpu.matmul %18, %19, %cst_12 {dimension_numbers = #tpu.dot_dimension_numbers<[1], [0], [0], [1], [0, 0, 1, 1], [], []>} : vector<32x32xbf16>, vector<32x16xbf16>, vector<32x16xf32> -> vector<32x16xf32>
    %21 = arith.addf %17, %20 : vector<32x16xf32>
    %c0_13 = arith.constant 0 : index
    %c0_14 = arith.constant 0 : index
    %22 = vector.load %arg7[%c0_13, %c0_14] : memref<1x16xf32, #tpu.memory_space<vmem>>, vector<1x16xf32>
    %23 = vector.broadcast %22 : vector<1x16xf32> to vector<32x16xf32>
    %24 = arith.addf %21, %23 : vector<32x16xf32>
    %cst_15 = arith.constant 0.000000e+00 : f32
    %25 = vector.broadcast %cst_15 : f32 to vector<32x16xf32>
    %26 = arith.maximumf %24, %25 : vector<32x16xf32>
    %27 = arith.truncf %26 : vector<32x16xf32> to vector<32x16xbf16>
    %c0_16 = arith.constant 0 : index
    %c0_17 = arith.constant 0 : index
    %28 = vector.load %arg8[%c0_16, %c0_17] : memref<16x32xbf16, #tpu.memory_space<vmem>>, vector<16x32xbf16>
    %cst_18 = arith.constant dense<0.000000e+00> : vector<32x32xf32>
    %29 = tpu.matmul %27, %28, %cst_18 {dimension_numbers = #tpu.dot_dimension_numbers<[1], [0], [0], [1], [0, 0, 1, 1], [], []>} : vector<32x16xbf16>, vector<16x32xbf16>, vector<32x32xf32> -> vector<32x32xf32>
    %c0_19 = arith.constant 0 : index
    %c0_20 = arith.constant 0 : index
    %30 = vector.load %arg9[%c0_19, %c0_20] : memref<1x32xf32, #tpu.memory_space<vmem>>, vector<1x32xf32>
    %31 = vector.broadcast %30 : vector<1x32xf32> to vector<32x32xf32>
    %32 = arith.addf %29, %31 : vector<32x32xf32>
    %cst_21 = arith.constant 0.000000e+00 : f32
    %33 = vector.broadcast %cst_21 : f32 to vector<32x32xf32>
    %34 = arith.maximumf %32, %33 : vector<32x32xf32>
    %35 = arith.truncf %34 : vector<32x32xf32> to vector<32x32xbf16>
    %c0_22 = arith.constant 0 : index
    %c0_23 = arith.constant 0 : index
    %36 = vector.load %arg10[%c0_22, %c0_23] : memref<32x1xbf16, #tpu.memory_space<vmem>>, vector<32x1xbf16>
    %cst_24 = arith.constant dense<0.000000e+00> : vector<32x1xf32>
    %37 = tpu.matmul %35, %36, %cst_24 {dimension_numbers = #tpu.dot_dimension_numbers<[1], [0], [0], [1], [0, 0, 1, 1], [], []>} : vector<32x32xbf16>, vector<32x1xbf16>, vector<32x1xf32> -> vector<32x1xf32>
    %c0_25 = arith.constant 0 : index
    %c0_26 = arith.constant 0 : index
    %38 = vector.load %arg11[%c0_25, %c0_26] : memref<1x1xf32, #tpu.memory_space<vmem>>, vector<1x1xf32>
    %39 = vector.broadcast %38 : vector<1x1xf32> to vector<32x1xf32>
    %40 = arith.addf %37, %39 : vector<32x1xf32>
    %c0_27 = arith.constant 0 : index
    %c0_28 = arith.constant 0 : index
    %41 = vector.load %arg12[%c0_27, %c0_28] : memref<32x1xf32, #tpu.memory_space<vmem>>, vector<32x1xf32>
    tpu.vector_store %arg12[%c0_27, %c0_28], %40 {strides = array<i32>} : memref<32x1xf32, #tpu.memory_space<vmem>>, vector<32x1xf32>,
    return
  }
  func.func @transform_0(%arg0: i32) -> (i32, i32) {
    %c0_i32 = arith.constant 0 : i32
    %c0_i32_0 = arith.constant 0 : i32
    return %arg0, %c0_i32 : i32, i32
  }
  func.func @transform_1(%arg0: i32) -> (i32, i32) {
    %c0_i32 = arith.constant 0 : i32
    %c0_i32_0 = arith.constant 0 : i32
    return %arg0, %c0_i32 : i32, i32
  }
  func.func @transform_2(%arg0: i32) -> (i32, i32) {
    %c0_i32 = arith.constant 0 : i32
    %c0_i32_0 = arith.constant 0 : i32
    return %arg0, %c0_i32 : i32, i32
  }
  func.func @transform_3(%arg0: i32) -> (i32, i32) {
    %c0_i32 = arith.constant 0 : i32
    %c0_i32_0 = arith.constant 0 : i32
    %c0_i32_1 = arith.constant 0 : i32
    return %c0_i32, %c0_i32_0 : i32, i32
  }
  func.func @transform_4(%arg0: i32) -> (i32, i32) {
    %c0_i32 = arith.constant 0 : i32
    %c0_i32_0 = arith.constant 0 : i32
    %c0_i32_1 = arith.constant 0 : i32
    return %c0_i32, %c0_i32_0 : i32, i32
  }
  func.func @transform_5(%arg0: i32) -> (i32, i32) {
    %c0_i32 = arith.constant 0 : i32
    %c0_i32_0 = arith.constant 0 : i32
    %c0_i32_1 = arith.constant 0 : i32
    return %c0_i32, %c0_i32_0 : i32, i32
  }
  func.func @transform_6(%arg0: i32) -> (i32, i32) {
    %c0_i32 = arith.constant 0 : i32
    %c0_i32_0 = arith.constant 0 : i32
    %c0_i32_1 = arith.constant 0 : i32
    return %c0_i32, %c0_i32_0 : i32, i32
  }
  func.func @transform_7(%arg0: i32) -> (i32, i32) {
    %c0_i32 = arith.constant 0 : i32
    %c0_i32_0 = arith.constant 0 : i32
    %c0_i32_1 = arith.constant 0 : i32
    return %c0_i32, %c0_i32_0 : i32, i32
  }
  func.func @transform_8(%arg0: i32) -> (i32, i32) {
    %c0_i32 = arith.constant 0 : i32
    %c0_i32_0 = arith.constant 0 : i32
    %c0_i32_1 = arith.constant 0 : i32
    return %c0_i32, %c0_i32_0 : i32, i32
  }
  func.func @transform_9(%arg0: i32) -> (i32, i32) {
    %c0_i32 = arith.constant 0 : i32
    %c0_i32_0 = arith.constant 0 : i32
    %c0_i32_1 = arith.constant 0 : i32
    return %c0_i32, %c0_i32_0 : i32, i32
  }
  func.func @transform_10(%arg0: i32) -> (i32, i32) {
    %c0_i32 = arith.constant 0 : i32
    %c0_i32_0 = arith.constant 0 : i32
    %c0_i32_1 = arith.constant 0 : i32
    return %c0_i32, %c0_i32_0 : i32, i32
  }
  func.func @transform_11(%arg0: i32) -> (i32, i32) {
    %c0_i32 = arith.constant 0 : i32
    %c0_i32_0 = arith.constant 0 : i32
    return %arg0, %c0_i32 : i32, i32
  }
}

module attributes {stable_mosaic.version = 11 : i64} {
  func.func @_score_predictor_kernel(%arg0: i32, %arg1: memref<32x1xi32, #tpu.memory_space<vmem>>, %arg2: memref<32x1xi32, #tpu.memory_space<vmem>>, %arg3: memref<32x32xbf16, #tpu.memory_space<vmem>>, %arg4: memref<16x16xbf16, #tpu.memory_space<vmem>>, %arg5: memref<16x16xbf16, #tpu.memory_space<vmem>>, %arg6: memref<32x16xbf16, #tpu.memory_space<vmem>>, %arg7: memref<1x16xf32, #tpu.memory_space<vmem>>, %arg8: memref<16x32xbf16, #tpu.memory_space<vmem>>, %arg9: memref<1x32xf32, #tpu.memory_space<vmem>>, %arg10: memref<32x1xbf16, #tpu.memory_space<vmem>>, %arg11: memref<1x1xf32, #tpu.memory_space<vmem>>, %arg12: memref<32x1xf32, #tpu.memory_space<vmem>>) attributes {dimension_semantics = [#tpu.dimension_semantics<parallel>], iteration_bounds = array<i64: 2>, scalar_prefetch = 0 : i64, scratch_operands = 0 : i64, tpu.core_type = #tpu.core_type<tc>, window_params = [{transform_indices = @transform_0, window_bounds = array<i64: 32, 1>}, {transform_indices = @transform_1, window_bounds = array<i64: 32, 1>}, {transform_indices = @transform_2, window_bounds = array<i64: 32, 32>}, {pipeline_mode = #tpu.pipeline_mode<synchronous>, transform_indices = @transform_3, window_bounds = array<i64: 16, 16>}, {pipeline_mode = #tpu.pipeline_mode<synchronous>, transform_indices = @transform_4, window_bounds = array<i64: 16, 16>}, {pipeline_mode = #tpu.pipeline_mode<synchronous>, transform_indices = @transform_5, window_bounds = array<i64: 32, 16>}, {pipeline_mode = #tpu.pipeline_mode<synchronous>, transform_indices = @transform_6, window_bounds = array<i64: 1, 16>}, {pipeline_mode = #tpu.pipeline_mode<synchronous>, transform_indices = @transform_7, window_bounds = array<i64: 16, 32>}, {pipeline_mode = #tpu.pipeline_mode<synchronous>, transform_indices = @transform_8, window_bounds = array<i64: 1, 32>}, {pipeline_mode = #tpu.pipeline_mode<synchronous>, transform_indices = @transform_9, window_bounds = array<i64: 32, 1>}, {pipeline_mode = #tpu.pipeline_mode<synchronous>, transform_indices = @transform_10, window_bounds = array<i64: 1, 1>}, {transform_indices = @transform_11, window_bounds = array<i64: 32, 1>}]} {
    %0 = tpu.iota {dimensions = array<i32: 1>} : vector<32x16xi32>
    %c0 = arith.constant 0 : index
    %c0_0 = arith.constant 0 : index
    %1 = vector.load %arg1[%c0, %c0_0] : memref<32x1xi32, #tpu.memory_space<vmem>>, vector<32x1xi32>
    %2 = vector.broadcast %1 : vector<32x1xi32> to vector<32x16xi32>
    %3 = arith.cmpi eq, %2, %0 : vector<32x16xi32>
    %4 = arith.extui %3 : vector<32x16xi1> to vector<32x16xi32>
    %5 = arith.sitofp %4 : vector<32x16xi32> to vector<32x16xf32>
    %6 = arith.truncf %5 : vector<32x16xf32> to vector<32x16xbf16>
    %c0_1 = arith.constant 0 : index
    %c0_2 = arith.constant 0 : index
    %7 = vector.load %arg2[%c0_1, %c0_2] : memref<32x1xi32, #tpu.memory_space<vmem>>, vector<32x1xi32>
    %8 = vector.broadcast %7 : vector<32x1xi32> to vector<32x16xi32>
    %9 = arith.cmpi eq, %8, %0 : vector<32x16xi32>
    %10 = arith.extui %9 : vector<32x16xi1> to vector<32x16xi32>
    %11 = arith.sitofp %10 : vector<32x16xi32> to vector<32x16xf32>
    %12 = arith.truncf %11 : vector<32x16xf32> to vector<32x16xbf16>
    %c0_3 = arith.constant 0 : index
    %c0_4 = arith.constant 0 : index
    %13 = vector.load %arg4[%c0_3, %c0_4] : memref<16x16xbf16, #tpu.memory_space<vmem>>, vector<16x16xbf16>
    %cst = arith.constant dense<0.000000e+00> : vector<32x16xf32>
    %14 = tpu.matmul %6, %13, %cst {dimension_numbers = #tpu.dot_dimension_numbers<[1], [0], [0], [1], [0, 0, 1, 1], [], []>} : vector<32x16xbf16>, vector<16x16xbf16>, vector<32x16xf32> -> vector<32x16xf32>
    %c0_5 = arith.constant 0 : index
    %c0_6 = arith.constant 0 : index
    %15 = vector.load %arg5[%c0_5, %c0_6] : memref<16x16xbf16, #tpu.memory_space<vmem>>, vector<16x16xbf16>
    %cst_7 = arith.constant dense<0.000000e+00> : vector<32x16xf32>
    %16 = tpu.matmul %12, %15, %cst_7 {dimension_numbers = #tpu.dot_dimension_numbers<[1], [0], [0], [1], [0, 0, 1, 1], [], []>} : vector<32x16xbf16>, vector<16x16xbf16>, vector<32x16xf32> -> vector<32x16xf32>
    %17 = arith.addf %14, %16 : vector<32x16xf32>
    %c0_8 = arith.constant 0 : index
    %c0_9 = arith.constant 0 : index
    %18 = vector.load %arg3[%c0_8, %c0_9] : memref<32x32xbf16, #tpu.memory_space<vmem>>, vector<32x32xbf16>
    %c0_10 = arith.constant 0 : index
    %c0_11 = arith.constant 0 : index
    %19 = vector.load %arg6[%c0_10, %c0_11] : memref<32x16xbf16, #tpu.memory_space<vmem>>, vector<32x16xbf16>
    %cst_12 = arith.constant dense<0.000000e+00> : vector<32x16xf32>
    %20 = tpu.matmul %18, %19, %cst_12 {dimension_numbers = #tpu.dot_dimension_numbers<[1], [0], [0], [1], [0, 0, 1, 1], [], []>} : vector<32x32xbf16>, vector<32x16xbf16>, vector<32x16xf32> -> vector<32x16xf32>
    %21 = arith.addf %17, %20 : vector<32x16xf32>
    %c0_13 = arith.constant 0 : index
    %c0_14 = arith.constant 0 : index
    %22 = vector.load %arg7[%c0_13, %c0_14] : memref<1x16xf32, #tpu.memory_space<vmem>>, vector<1x16xf32>
    %23 = vector.broadcast %22 : vector<1x16xf32> to vector<32x16xf32>
    %24 = arith.addf %21, %23 : vector<32x16xf32>
    %cst_15 = arith.constant 0.000000e+00 : f32
    %25 = vector.broadcast %cst_15 : f32 to vector<32x16xf32>
    %26 = arith.maximumf %24, %25 : vector<32x16xf32>
    %27 = arith.truncf %26 : vector<32x16xf32> to vector<32x16xbf16>
    %c0_16 = arith.constant 0 : index
    %c0_17 = arith.constant 0 : index
    %28 = vector.load %arg8[%c0_16, %c0_17] : memref<16x32xbf16, #tpu.memory_space<vmem>>, vector<16x32xbf16>
    %cst_18 = arith.constant dense<0.000000e+00> : vector<32x32xf32>
    %29 = tpu.matmul %27, %28, %cst_18 {dimension_numbers = #tpu.dot_dimension_numbers<[1], [0], [0], [1], [0, 0, 1, 1], [], []>} : vector<32x16xbf16>, vector<16x32xbf16>, vector<32x32xf32> -> vector<32x32xf32>
    %c0_19 = arith.constant 0 : index
    %c0_20 = arith.constant 0 : index
    %30 = vector.load %arg9[%c0_19, %c0_20] : memref<1x32xf32, #tpu.memory_space<vmem>>, vector<1x32xf32>
    %31 = vector.broadcast %30 : vector<1x32xf32> to vector<32x32xf32>
    %32 = arith.addf %29, %31 : vector<32x32xf32>
    %cst_21 = arith.constant 0.000000e+00 : f32
    %33 = vector.broadcast %cst_21 : f32 to vector<32x32xf32>
    %34 = arith.maximumf %32, %33 : vector<32x32xf32>
    %35 = arith.truncf %34 : vector<32x32xf32> to vector<32x32xbf16>
    %c0_22 = arith.constant 0 : index
    %c0_23 = arith.constant 0 : index
    %36 = vector.load %arg10[%c0_22, %c0_23] : memref<32x1xbf16, #tpu.memory_space<vmem>>, vector<32x1xbf16>
    %cst_24 = arith.constant dense<0.000000e+00> : vector<32x1xf32>
    %37 = tpu.matmul %35, %36, %cst_24 {dimension_numbers = #tpu.dot_dimension_numbers<[1], [0], [0], [1], [0, 0, 1, 1], [], []>} : vector<32x32xbf16>, vector<32x1xbf16>, vector<32x1xf32> -> vector<32x1xf32>
    %c0_25 = arith.constant 0 : index
    %c0_26 = arith.constant 0 : index
    %38 = vector.load %arg11[%c0_25, %c0_26] : memref<1x1xf32, #tpu.memory_space<vmem>>, vector<1x1xf32>
    %39 = vector.broadcast %38 : vector<1x1xf32> to vector<32x1xf32>
    %40 = arith.addf %37, %39 : vector<32x1xf32>
    %c0_27 = arith.constant 0 : index
    %c0_28 = arith.constant 0 : index
    %41 = vector.load %arg12[%c0_27, %c0_28] : memref<32x1xf32, #tpu.memory_space<vmem>>, vector<32x1xf32>
    tpu.vector_store %arg12[%c0_27, %c0_28], %40 {strides = array<i32>} : memref<32x1xf32, #tpu.memory_space<vmem>>, vector<32x1xf32>,
    return
  }
  func.func @transform_0(%arg0: i32) -> (i32, i32) {
    %c0_i32 = arith.constant 0 : i32
    %c0_i32_0 = arith.constant 0 : i32
    return %arg0, %c0_i32 : i32, i32
  }
  func.func @transform_1(%arg0: i32) -> (i32, i32) {
    %c0_i32 = arith.constant 0 : i32
    %c0_i32_0 = arith.constant 0 : i32
    return %arg0, %c0_i32 : i32, i32
  }
  func.func @transform_2(%arg0: i32) -> (i32, i32) {
    %c0_i32 = arith.constant 0 : i32
    %c0_i32_0 = arith.constant 0 : i32
    return %arg0, %c0_i32 : i32, i32
  }
  func.func @transform_3(%arg0: i32) -> (i32, i32) {
    %c0_i32 = arith.constant 0 : i32
    %c0_i32_0 = arith.constant 0 : i32
    %c0_i32_1 = arith.constant 0 : i32
    return %c0_i32, %c0_i32_0 : i32, i32
  }
  func.func @transform_4(%arg0: i32) -> (i32, i32) {
    %c0_i32 = arith.constant 0 : i32
    %c0_i32_0 = arith.constant 0 : i32
    %c0_i32_1 = arith.constant 0 : i32
    return %c0_i32, %c0_i32_0 : i32, i32
  }
  func.func @transform_5(%arg0: i32) -> (i32, i32) {
    %c0_i32 = arith.constant 0 : i32
    %c0_i32_0 = arith.constant 0 : i32
    %c0_i32_1 = arith.constant 0 : i32
    return %c0_i32, %c0_i32_0 : i32, i32
  }
  func.func @transform_6(%arg0: i32) -> (i32, i32) {
    %c0_i32 = arith.constant 0 : i32
    %c0_i32_0 = arith.constant 0 : i32
    %c0_i32_1 = arith.constant 0 : i32
    return %c0_i32, %c0_i32_0 : i32, i32
  }
  func.func @transform_7(%arg0: i32) -> (i32, i32) {
    %c0_i32 = arith.constant 0 : i32
    %c0_i32_0 = arith.constant 0 : i32
    %c0_i32_1 = arith.constant 0 : i32
    return %c0_i32, %c0_i32_0 : i32, i32
  }
  func.func @transform_8(%arg0: i32) -> (i32, i32) {
    %c0_i32 = arith.constant 0 : i32
    %c0_i32_0 = arith.constant 0 : i32
    %c0_i32_1 = arith.constant 0 : i32
    return %c0_i32, %c0_i32_0 : i32, i32
  }
  func.func @transform_9(%arg0: i32) -> (i32, i32) {
    %c0_i32 = arith.constant 0 : i32
    %c0_i32_0 = arith.constant 0 : i32
    %c0_i32_1 = arith.constant 0 : i32
    return %c0_i32, %c0_i32_0 : i32, i32
  }
  func.func @transform_10(%arg0: i32) -> (i32, i32) {
    %c0_i32 = arith.constant 0 : i32
    %c0_i32_0 = arith.constant 0 : i32
    %c0_i32_1 = arith.constant 0 : i32
    return %c0_i32, %c0_i32_0 : i32, i32
  }
  func.func @transform_11(%arg0: i32) -> (i32, i32) {
    %c0_i32 = arith.constant 0 : i32
    %c0_i32_0 = arith.constant 0 : i32
    return %arg0, %c0_i32 : i32, i32
  }
}

</mosaic_0001>

<bundles_post_ra>
// kernel: tpu_custom_call.1
= control target key start
LH: loop header
LB: loop body
LE: loop exit
PB: predicated region body
PF: predicated region fallthrough
CT: control target
= control target key end

     0   :  { %s1170_s19 = smov 0   ;;  %s1239_s0 = inlined_call_operand.vmem [shape: s32[64,1], index: 0, kind: input, shape index: {}]   ;;  %s1240_s1 = inlined_call_operand.vmem [shape: s32[64,1], index: 1, kind: input, shape index: {}]   ;;  %s1241_s2 = inlined_call_operand.vmem [shape: bf16[64,32], index: 2, kind: input, shape index: {}]   ;;  %s1242_s3 = inlined_call_operand.vmem [shape: bf16[16,16], index: 3, kind: input, shape index: {}]   ;;  %s1243_s4 = inlined_call_operand.vmem [shape: bf16[16,16], index: 4, kind: input, shape index: {}]   ;;  %s1244_s5 = inlined_call_operand.vmem [shape: bf16[32,16], index: 5, kind: input, shape index: {}]   ;;  %s1245_s6 = inlined_call_operand.vmem [shape: f32[1,16], index: 6, kind: input, shape index: {}]   ;;  %s1246_s7 = inlined_call_operand.vmem [shape: bf16[16,32], index: 7, kind: input, shape index: {}]   ;;  %s1247_s8 = inlined_call_operand.vmem [shape: f32[1,32], index: 8, kind: input, shape index: {}]   ;;  %s1248_s9 = inlined_call_operand.vmem [shape: bf16[32,1], index: 9, kind: input, shape index: {}]   ;;  %s1249_s10 = inlined_call_operand.<no memory space> [shape: f32[1,1], index: 10, kind: input, shape index: {}]   ;;  %s1250_s11 = inlined_call_operand.vmem [shape: f32[64,1], index: 11, kind: output, shape index: {}]  }
   0x1   :  { %v16_v0 = vstv %s1249_s10 }
   0x2   :  { %17 = vst [vmem:[#allocation2] sm:$0x1] %v16_v0 }
   0x3 LB: > { %s972_s20 = sadd.s32 4294967295, %s1103_s19   ;;  %p976_p0 = scmp.ge.s32.totalorder %s1103_s19, 1  ;;  %s1103_s19 = sphi %s1170_s19, %s23_s19  }
   0x4   : > { %p362_p1 = scmp.lt.s32.totalorder %s1103_s19, 3 }
   0x6   : > { %p363_p2 = pnand %p976_p0, %p362_p1 }
   0x7   : > { %s977_s21 = sshll.u32 (!%p363_p2), %s972_s20, 2  ;;  %v1105_v1 = vmov (!%p363_p2), 0   ;;  %v1088_v6 = vld [vmem:[%s1243_s4] sm:$0xff] (!%p363_p2)   ;;  %v437_v12 = vlaneseq (!%p363_p2)  ;;  %vm509_vm4 = vcmask (!%p363_p2), 130048   ;;  %v1106_v18 = vmov (!%p363_p2), 0.0   ;;  %v1091_v37 = vld [vmem:[%s1244_s5 + $0x8] sm:$0xff] (!%p363_p2)  }
   0x8   : > { %366 = sbr.rel (%p363_p2) target bundleno = 842 (0x34a), region = 64  ;;  %1087 = vset.pattern.permute.xlu1 (!%p363_p2), %v1105_v1  ;;  %1086 = vset.pattern.permute.xlu0 (!%p363_p2), %v1105_v1  ;;  %p413_p3 = scmp.lt.s32.totalorder (!%p363_p2), %s977_s21, 7  ;;  %v1089_v11 = vld [vmem:[%s1242_s3] sm:$0xff] (!%p363_p2)   ;;  %vm656_vm9 = vcmask (!%p363_p2), 261120   ;;  %v1096_v56 = vld [vmem:[%s1248_s9 + $0x8] sm:$0xff] (!%p363_p2)   ;;  %vm887_vm10 = vcmask (!%p363_p2), 7168  }
   0x9   : > { %1034 = vmatprep.subr.bf16.mxu0 (!%p363_p2), %v1088_v6  ;;  %v438_v13 = vand.u32 (!%p363_p2), 127, %v437_v12  ;;  %v1090_v27 = vld [vmem:[%s1244_s5] sm:$0xff] (!%p363_p2)  }
   0xa   : > { %1035 = vmatpush3.bf16.msra.mxu0 (!%p363_p2), %v1088_v6  ;;  %v1094_v39 = vld [vmem:[%s1246_s7] sm:$0xff] (!%p363_p2)  }
   0xb   : > { %1040 = vmatprep.subr.bf16.mxu0 (!%p363_p2), %v1089_v11  ;;  %1054 = vmatprep.subr.bf16.mxu1 (!%p363_p2), %v1094_v39  ;;  %v1005_v40 = vld [vmem:[%s1245_s6] ss:$0 sm:$0xff] (!%p363_p2) }
   0xc   : > { %1055 = vmatpush3.bf16.msra.mxu1 (!%p363_p2), %v1094_v39  ;;  %v1095_v55 = vld [vmem:[%s1248_s9] sm:$0xff] (!%p363_p2)  }
   0xd   : > { %1060 = vmatprep.subr.bf16.mxu1 (!%p363_p2), %v1095_v55  ;;  %v1006_v57 = vld [vmem:[%s1247_s8] ss:$0 sm:$0xff] (!%p363_p2) }
   0xf   : > { %s1252_s21 = smov (!%p413_p3, %s977_s21), 7 }
  0x10   : > { %s1178_s10 = sshll.u32 %s1252_s21, 3  ;;  %s982_s22 = sshll.u32 %s1252_s21, 2 }
  0x11   : > { %s422_s25 = scalar_lea.vmem %s1240_s1, %s1178_s10  ;;  %s1187_s28 = scalar_lea.vmem %s1241_s2, %s982_s22 }
  0x12   : > { %v471_v2 = vld [vmem:[%s422_s25 + $0x10] sm:$0xff]  ;;  %v469_v3 = vld [vmem:[%s422_s25] sm:$0xff]  ;;  %v472_v4 = vld [vmem:[%s422_s25 + $0x18] sm:$0xff]  ;;  %s416_s12 = scalar_lea.vmem %s1239_s0, %s1178_s10  ;;  %s434_s15 = scalar_lea.vmem %s1250_s11, %s1178_s10 }
  0x13   : > { %480 = vperm.xlu1 %1087, %v471_v2   ;;  %474 = vperm.xlu0 %1086, %v469_v3   ;;  %v470_v5 = vld [vmem:[%s422_s25 + $0x8] sm:$0xff]  ;;  %v439_v8 = vld [vmem:[%s416_s12] sm:$0xff]  ;;  %v442_v9 = vld [vmem:[%s416_s12 + $0x18] sm:$0xff] }
  0x14   : > { %v440_v7 = vld [vmem:[%s416_s12 + $0x8] sm:$0xff]  ;;  %v441_v10 = vld [vmem:[%s416_s12 + $0x10] sm:$0xff]  ;;  %v1092_v35 = vld [vmem:[%s1187_s28] sm:$0xff]  }
  0x15   : > { %v1093_v38 = vld [vmem:[%s1187_s28 + $0x8] sm:$0xff]  }
  0x17   : > { %483 = vperm.xlu1 %1087, %v472_v4   ;;  %477 = vperm.xlu0 %1086, %v470_v5  }
  0x1b   : > { %447 = vperm.xlu1 %1087, %v440_v7   ;;  %444 = vperm.xlu0 %1086, %v439_v8   ;;  %v1010_v8 = vld [vmem:[#allocation2] ss:$0 sm:$0xff] }
  0x1f   : > { %453 = vperm.xlu1 %1087, %v442_v9   ;;  %450 = vperm.xlu0 %1086, %v441_v10  }
  0x92   : > { %v481_v14 = vpop.permute.xlu1 %480  ;;  %v475_v15 = vpop.permute.xlu0 %474 }
  0x93   : > { %vm487_vm0 = vcmp.eq.s32.totalorder %v481_v14, %v438_v13  ;;  %vm485_vm1 = vcmp.eq.s32.totalorder %v475_v15, %v438_v13 }
  0x94   : > { %v991_v19 = vsel %vm487_vm0, 1.0, %v1106_v18  ;;  %v989_v20 = vsel %vm485_vm1, 1.0, %v1106_v18 }
  0x96   : > { %v484_v16 = vpop.permute.xlu1 %483  ;;  %v478_v17 = vpop.permute.xlu0 %477 }
  0x97   : > { %vm488_vm2 = vcmp.eq.s32.totalorder %v484_v16, %v438_v13  ;;  %vm486_vm3 = vcmp.eq.s32.totalorder %v478_v17, %v438_v13 }
  0x98   : > { %v992_v21 = vsel %vm488_vm2, 1.0, %v1106_v18  ;;  %v990_v22 = vsel %vm486_vm3, 1.0, %v1106_v18 }
  0x99   : > { %v498_v23 = vpack.c.bf16 %v992_v21, %v991_v19  ;;  %v497_v24 = vpack.c.bf16 %v990_v22, %v989_v20 }
  0x9a   : > { %v448_v25 = vpop.permute.xlu1 %447  ;;  %v445_v26 = vpop.permute.xlu0 %444 }
  0x9b   : > { %vm456_vm5 = vcmp.eq.s32.totalorder %v448_v25, %v438_v13  ;;  %vm455_vm6 = vcmp.eq.s32.totalorder %v445_v26, %v438_v13  ;;  %1036 = vmatprep.mubr.msk.bf16.mxu0 %vm509_vm4, %v497_v24 }
  0x9c   : > { %v986_v28 = vsel %vm456_vm5, 1.0, %v1106_v18  ;;  %v985_v29 = vsel %vm455_vm6, 1.0, %v1106_v18  ;;  %1037 = vmatmul.mubr.msk.bf16.vlgmr.msra.gmra.mrb[0].mxu0 %vm509_vm4, %v498_v23 }
  0x9d   : > { %v467_v30 = vpack.c.bf16 %v986_v28, %v985_v29  ;;  %1041 = vmatpush3.bf16.msra.mxu0 %v1089_v11 }
  0x9e   : > { %v454_v31 = vpop.permute.xlu1 %453  ;;  %v451_v32 = vpop.permute.xlu0 %450  ;;  %1046 = vmatprep.subr.bf16.mxu0 %v1090_v27 }
  0x9f   : > { %1042 = vmatprep.mubr.msk.bf16.mxu0 %vm509_vm4, %v467_v30  ;;  %vm458_vm7 = vcmp.eq.s32.totalorder %v454_v31, %v438_v13  ;;  %vm457_vm8 = vcmp.eq.s32.totalorder %v451_v32, %v438_v13 }
  0xa0   : > { %v988_v33 = vsel %vm458_vm7, 1.0, %v1106_v18  ;;  %v987_v34 = vsel %vm457_vm8, 1.0, %v1106_v18 }
  0xa1   : > { %v468_v36 = vpack.c.bf16 %v988_v33, %v987_v34 }
  0xa8   : > { %1043 = vmatmul.mubr.msk.bf16.vlgmr.msra.gmra.mrb[0].mxu0 %vm509_vm4, %v468_v36 }
  0xa9   : > { %1047 = vmatpush3.bf16.msra.mxu0 %v1090_v27  ;;  %1050 = vmatprep.mubr.msk.bf16.mxu0 %vm656_vm9, %v1092_v35 }
  0xaa   : > { %1048 = vmatprep.subr.bf16.mxu0 %v1091_v37 }
  0xad   : > { %1049 = vmatpush3.bf16.msra.mxu0 %v1091_v37 }
  0xb4   : > { %1051 = vmatmul.mubr.msk.bf16.vlgmr.msra.gmra.mrb[0].mxu0 %vm656_vm9, %v1093_v38 }
 0x187   : > { %v1052_v41 = vpop.f32.mrb[0].mxu0 }
 0x188   : > { %v725_v42 = vadd.f32 %v1052_v41, %v1005_v40  ;;  %v697_v43 = vpop.f32.mrb[1].mxu0 }
 0x189   : > { %v723_v44 = vadd.f32 %v1005_v40, %v697_v43  ;;  %v1053_v45 = vpop.f32.mrb[2].mxu0 }
 0x18a   : > { %v726_v46 = vadd.f32 %v1053_v45, %v1005_v40  ;;  %v700_v47 = vpop.f32.mrb[3].mxu0  ;;  %v729_v49 = vmax.f32 %v725_v42, 0.0 }
 0x18b   : > { %v724_v48 = vadd.f32 %v1005_v40, %v700_v47  ;;  %v727_v51 = vmax.f32 %v723_v44, 0.0 }
 0x18c   : > { %v730_v50 = vmax.f32 %v726_v46, 0.0 }
 0x18d   : > { %v728_v52 = vmax.f32 %v724_v48, 0.0 }
 0x18e   : > { %v732_v53 = vpack.c.bf16 %v730_v50, %v729_v49 }
 0x18f   : > { %v731_v54 = vpack.c.bf16 %v728_v52, %v727_v51 }
 0x191   : > { %1056 = vmatprep.mubr.msk.bf16.mxu1 %vm509_vm4, %v731_v54 }
 0x192   : > { %1057 = vmatmul.mubr.msk.bf16.vlgmr.msra.gmra.mrb[0].mxu1 %vm509_vm4, %v732_v53 }
 0x193   : > { %1061 = vmatpush3.bf16.msra.mxu1 %v1095_v55 }
 0x194   : > { %1062 = vmatprep.subr.bf16.mxu1 %v1096_v56 }
 0x197   : > { %1063 = vmatpush3.bf16.msra.mxu1 %v1096_v56 }
 0x265   : > { %v1058_v58 = vpop.f32.mrb[0].mxu1 }
 0x266   : > { %v797_v59 = vadd.f32 %v1058_v58, %v1006_v57  ;;  %v788_v60 = vpop.f32.mrb[1].mxu1 }
 0x267   : > { %v789_v61 = vadd.f32 %v1006_v57, %v788_v60  ;;  %v1059_v62 = vpop.f32.mrb[2].mxu1 }
 0x268   : > { %v800_v63 = vadd.f32 %v1059_v62, %v1006_v57  ;;  %v791_v0 = vpop.f32.mrb[3].mxu1  ;;  %v805_v2 = vmax.f32 %v797_v59, 0.0 }
 0x269   : > { %v792_v1 = vadd.f32 %v1006_v57, %v791_v0  ;;  %v803_v4 = vmax.f32 %v789_v61, 0.0 }
 0x26a   : > { %v806_v3 = vmax.f32 %v800_v63, 0.0 }
 0x26b   : > { %v804_v5 = vmax.f32 %v792_v1, 0.0 }
 0x26c   : > { %v808_v6 = vpack.c.bf16 %v806_v3, %v805_v2 }
 0x26d   : > { %v807_v7 = vpack.c.bf16 %v804_v5, %v803_v4 }
 0x26f   : > { %1064 = vmatprep.mubr.msk.bf16.mxu1 %vm656_vm9, %v807_v7 }
 0x270   : > { %1065 = vmatmul.mubr.msk.bf16.vlgmr.msra.gmra.mrb[4].mxu1 %vm656_vm9, %v808_v6 }
 0x343   : > { %v1066_v9 = vpop.f32.mrb[4].mxu1 }
 0x344   : > { %v872_v10 = vpop.f32.mrb[5].mxu1  ;;  %v881_v15 = vadd.f32 %v1066_v9, %v1010_v8 }
 0x345   : > { %v873_v11 = vadd.f32 %v1010_v8, %v872_v10  ;;  %v1067_v12 = vpop.f32.mrb[6].mxu1 }
 0x346   : > { %v875_v13 = vpop.f32.mrb[7].mxu1  ;;  %v884_v16 = vadd.f32 %v1067_v12, %v1010_v8  ;;  %890 = vst.msk [vmem:[%s434_s15 + $0x10] sm:$0xff] %vm887_vm10, %v881_v15 }
 0x347   : > { %888 = vst.msk [vmem:[%s434_s15] sm:$0xff] %vm887_vm10, %v873_v11  ;;  %v876_v14 = vadd.f32 %v1010_v8, %v875_v13 }
 0x348   : > { %891 = vst.msk [vmem:[%s434_s15 + $0x18] sm:$0xff] %vm887_vm10, %v884_v16 }
 0x349   : > { %889 = vst.msk [vmem:[%s434_s15 + $0x8] sm:$0xff] %vm887_vm10, %v876_v14 }
 0x34a PF: > { %s23_s19 = sadd.s32 1, %s1103_s19  }
 0x34b   : > { %p20_p4 = scmp.ge.s32.totalorder %s23_s19, 4  }
 0x34d   :  { %22 = sbr.rel (!%p20_p4) target bundleno = 3 (0x3), region = 100 }

// kernel: tpu_custom_call.1
= control target key start
LH: loop header
LB: loop body
LE: loop exit
PB: predicated region body
PF: predicated region fallthrough
CT: control target
= control target key end

     0   :  { %s1170_s19 = smov 0   ;;  %s1239_s0 = inlined_call_operand.vmem [shape: s32[64,1], index: 0, kind: input, shape index: {}]   ;;  %s1240_s1 = inlined_call_operand.vmem [shape: s32[64,1], index: 1, kind: input, shape index: {}]   ;;  %s1241_s2 = inlined_call_operand.vmem [shape: bf16[64,32], index: 2, kind: input, shape index: {}]   ;;  %s1242_s3 = inlined_call_operand.vmem [shape: bf16[16,16], index: 3, kind: input, shape index: {}]   ;;  %s1243_s4 = inlined_call_operand.vmem [shape: bf16[16,16], index: 4, kind: input, shape index: {}]   ;;  %s1244_s5 = inlined_call_operand.vmem [shape: bf16[32,16], index: 5, kind: input, shape index: {}]   ;;  %s1245_s6 = inlined_call_operand.vmem [shape: f32[1,16], index: 6, kind: input, shape index: {}]   ;;  %s1246_s7 = inlined_call_operand.vmem [shape: bf16[16,32], index: 7, kind: input, shape index: {}]   ;;  %s1247_s8 = inlined_call_operand.vmem [shape: f32[1,32], index: 8, kind: input, shape index: {}]   ;;  %s1248_s9 = inlined_call_operand.vmem [shape: bf16[32,1], index: 9, kind: input, shape index: {}]   ;;  %s1249_s10 = inlined_call_operand.<no memory space> [shape: f32[1,1], index: 10, kind: input, shape index: {}]   ;;  %s1250_s11 = inlined_call_operand.vmem [shape: f32[64,1], index: 11, kind: output, shape index: {}]  }
   0x1   :  { %v16_v0 = vstv %s1249_s10 }
   0x2   :  { %17 = vst [vmem:[#allocation2] sm:$0x1] %v16_v0 }
   0x3 LB: > { %s972_s20 = sadd.s32 4294967295, %s1103_s19   ;;  %p976_p0 = scmp.ge.s32.totalorder %s1103_s19, 1  ;;  %s1103_s19 = sphi %s1170_s19, %s23_s19  }
   0x4   : > { %p362_p1 = scmp.lt.s32.totalorder %s1103_s19, 3 }
   0x6   : > { %p363_p2 = pnand %p976_p0, %p362_p1 }
   0x7   : > { %s977_s21 = sshll.u32 (!%p363_p2), %s972_s20, 2  ;;  %v1105_v1 = vmov (!%p363_p2), 0   ;;  %v1088_v6 = vld [vmem:[%s1243_s4] sm:$0xff] (!%p363_p2)   ;;  %v437_v12 = vlaneseq (!%p363_p2)  ;;  %vm509_vm4 = vcmask (!%p363_p2), 130048   ;;  %v1106_v18 = vmov (!%p363_p2), 0.0   ;;  %v1091_v37 = vld [vmem:[%s1244_s5 + $0x8] sm:$0xff] (!%p363_p2)  }
   0x8   : > { %366 = sbr.rel (%p363_p2) target bundleno = 842 (0x34a), region = 64  ;;  %1087 = vset.pattern.permute.xlu1 (!%p363_p2), %v1105_v1  ;;  %1086 = vset.pattern.permute.xlu0 (!%p363_p2), %v1105_v1  ;;  %p413_p3 = scmp.lt.s32.totalorder (!%p363_p2), %s977_s21, 7  ;;  %v1089_v11 = vld [vmem:[%s1242_s3] sm:$0xff] (!%p363_p2)   ;;  %vm656_vm9 = vcmask (!%p363_p2), 261120   ;;  %v1096_v56 = vld [vmem:[%s1248_s9 + $0x8] sm:$0xff] (!%p363_p2)   ;;  %vm887_vm10 = vcmask (!%p363_p2), 7168  }
   0x9   : > { %1034 = vmatprep.subr.bf16.mxu0 (!%p363_p2), %v1088_v6  ;;  %v438_v13 = vand.u32 (!%p363_p2), 127, %v437_v12  ;;  %v1090_v27 = vld [vmem:[%s1244_s5] sm:$0xff] (!%p363_p2)  }
   0xa   : > { %1035 = vmatpush3.bf16.msra.mxu0 (!%p363_p2), %v1088_v6  ;;  %v1094_v39 = vld [vmem:[%s1246_s7] sm:$0xff] (!%p363_p2)  }
   0xb   : > { %1040 = vmatprep.subr.bf16.mxu0 (!%p363_p2), %v1089_v11  ;;  %1054 = vmatprep.subr.bf16.mxu1 (!%p363_p2), %v1094_v39  ;;  %v1005_v40 = vld [vmem:[%s1245_s6] ss:$0 sm:$0xff] (!%p363_p2) }
   0xc   : > { %1055 = vmatpush3.bf16.msra.mxu1 (!%p363_p2), %v1094_v39  ;;  %v1095_v55 = vld [vmem:[%s1248_s9] sm:$0xff] (!%p363_p2)  }
   0xd   : > { %1060 = vmatprep.subr.bf16.mxu1 (!%p363_p2), %v1095_v55  ;;  %v1006_v57 = vld [vmem:[%s1247_s8] ss:$0 sm:$0xff] (!%p363_p2) }
   0xf   : > { %s1252_s21 = smov (!%p413_p3, %s977_s21), 7 }
  0x10   : > { %s1178_s10 = sshll.u32 %s1252_s21, 3  ;;  %s982_s22 = sshll.u32 %s1252_s21, 2 }
  0x11   : > { %s422_s25 = scalar_lea.vmem %s1240_s1, %s1178_s10  ;;  %s1187_s28 = scalar_lea.vmem %s1241_s2, %s982_s22 }
  0x12   : > { %v471_v2 = vld [vmem:[%s422_s25 + $0x10] sm:$0xff]  ;;  %v469_v3 = vld [vmem:[%s422_s25] sm:$0xff]  ;;  %v472_v4 = vld [vmem:[%s422_s25 + $0x18] sm:$0xff]  ;;  %s416_s12 = scalar_lea.vmem %s1239_s0, %s1178_s10  ;;  %s434_s15 = scalar_lea.vmem %s1250_s11, %s1178_s10 }
  0x13   : > { %480 = vperm.xlu1 %1087, %v471_v2   ;;  %474 = vperm.xlu0 %1086, %v469_v3   ;;  %v470_v5 = vld [vmem:[%s422_s25 + $0x8] sm:$0xff]  ;;  %v439_v8 = vld [vmem:[%s416_s12] sm:$0xff]  ;;  %v442_v9 = vld [vmem:[%s416_s12 + $0x18] sm:$0xff] }
  0x14   : > { %v440_v7 = vld [vmem:[%s416_s12 + $0x8] sm:$0xff]  ;;  %v441_v10 = vld [vmem:[%s416_s12 + $0x10] sm:$0xff]  ;;  %v1092_v35 = vld [vmem:[%s1187_s28] sm:$0xff]  }
  0x15   : > { %v1093_v38 = vld [vmem:[%s1187_s28 + $0x8] sm:$0xff]  }
  0x17   : > { %483 = vperm.xlu1 %1087, %v472_v4   ;;  %477 = vperm.xlu0 %1086, %v470_v5  }
  0x1b   : > { %447 = vperm.xlu1 %1087, %v440_v7   ;;  %444 = vperm.xlu0 %1086, %v439_v8   ;;  %v1010_v8 = vld [vmem:[#allocation2] ss:$0 sm:$0xff] }
  0x1f   : > { %453 = vperm.xlu1 %1087, %v442_v9   ;;  %450 = vperm.xlu0 %1086, %v441_v10  }
  0x92   : > { %v481_v14 = vpop.permute.xlu1 %480  ;;  %v475_v15 = vpop.permute.xlu0 %474 }
  0x93   : > { %vm487_vm0 = vcmp.eq.s32.totalorder %v481_v14, %v438_v13  ;;  %vm485_vm1 = vcmp.eq.s32.totalorder %v475_v15, %v438_v13 }
  0x94   : > { %v991_v19 = vsel %vm487_vm0, 1.0, %v1106_v18  ;;  %v989_v20 = vsel %vm485_vm1, 1.0, %v1106_v18 }
  0x96   : > { %v484_v16 = vpop.permute.xlu1 %483  ;;  %v478_v17 = vpop.permute.xlu0 %477 }
  0x97   : > { %vm488_vm2 = vcmp.eq.s32.totalorder %v484_v16, %v438_v13  ;;  %vm486_vm3 = vcmp.eq.s32.totalorder %v478_v17, %v438_v13 }
  0x98   : > { %v992_v21 = vsel %vm488_vm2, 1.0, %v1106_v18  ;;  %v990_v22 = vsel %vm486_vm3, 1.0, %v1106_v18 }
  0x99   : > { %v498_v23 = vpack.c.bf16 %v992_v21, %v991_v19  ;;  %v497_v24 = vpack.c.bf16 %v990_v22, %v989_v20 }
  0x9a   : > { %v448_v25 = vpop.permute.xlu1 %447  ;;  %v445_v26 = vpop.permute.xlu0 %444 }
  0x9b   : > { %vm456_vm5 = vcmp.eq.s32.totalorder %v448_v25, %v438_v13  ;;  %vm455_vm6 = vcmp.eq.s32.totalorder %v445_v26, %v438_v13  ;;  %1036 = vmatprep.mubr.msk.bf16.mxu0 %vm509_vm4, %v497_v24 }
  0x9c   : > { %v986_v28 = vsel %vm456_vm5, 1.0, %v1106_v18  ;;  %v985_v29 = vsel %vm455_vm6, 1.0, %v1106_v18  ;;  %1037 = vmatmul.mubr.msk.bf16.vlgmr.msra.gmra.mrb[0].mxu0 %vm509_vm4, %v498_v23 }
  0x9d   : > { %v467_v30 = vpack.c.bf16 %v986_v28, %v985_v29  ;;  %1041 = vmatpush3.bf16.msra.mxu0 %v1089_v11 }
  0x9e   : > { %v454_v31 = vpop.permute.xlu1 %453  ;;  %v451_v32 = vpop.permute.xlu0 %450  ;;  %1046 = vmatprep.subr.bf16.mxu0 %v1090_v27 }
  0x9f   : > { %1042 = vmatprep.mubr.msk.bf16.mxu0 %vm509_vm4, %v467_v30  ;;  %vm458_vm7 = vcmp.eq.s32.totalorder %v454_v31, %v438_v13  ;;  %vm457_vm8 = vcmp.eq.s32.totalorder %v451_v32, %v438_v13 }
  0xa0   : > { %v988_v33 = vsel %vm458_vm7, 1.0, %v1106_v18  ;;  %v987_v34 = vsel %vm457_vm8, 1.0, %v1106_v18 }
  0xa1   : > { %v468_v36 = vpack.c.bf16 %v988_v33, %v987_v34 }
  0xa8   : > { %1043 = vmatmul.mubr.msk.bf16.vlgmr.msra.gmra.mrb[0].mxu0 %vm509_vm4, %v468_v36 }
  0xa9   : > { %1047 = vmatpush3.bf16.msra.mxu0 %v1090_v27  ;;  %1050 = vmatprep.mubr.msk.bf16.mxu0 %vm656_vm9, %v1092_v35 }
  0xaa   : > { %1048 = vmatprep.subr.bf16.mxu0 %v1091_v37 }
  0xad   : > { %1049 = vmatpush3.bf16.msra.mxu0 %v1091_v37 }
  0xb4   : > { %1051 = vmatmul.mubr.msk.bf16.vlgmr.msra.gmra.mrb[0].mxu0 %vm656_vm9, %v1093_v38 }
 0x187   : > { %v1052_v41 = vpop.f32.mrb[0].mxu0 }
 0x188   : > { %v725_v42 = vadd.f32 %v1052_v41, %v1005_v40  ;;  %v697_v43 = vpop.f32.mrb[1].mxu0 }
 0x189   : > { %v723_v44 = vadd.f32 %v1005_v40, %v697_v43  ;;  %v1053_v45 = vpop.f32.mrb[2].mxu0 }
 0x18a   : > { %v726_v46 = vadd.f32 %v1053_v45, %v1005_v40  ;;  %v700_v47 = vpop.f32.mrb[3].mxu0  ;;  %v729_v49 = vmax.f32 %v725_v42, 0.0 }
 0x18b   : > { %v724_v48 = vadd.f32 %v1005_v40, %v700_v47  ;;  %v727_v51 = vmax.f32 %v723_v44, 0.0 }
 0x18c   : > { %v730_v50 = vmax.f32 %v726_v46, 0.0 }
 0x18d   : > { %v728_v52 = vmax.f32 %v724_v48, 0.0 }
 0x18e   : > { %v732_v53 = vpack.c.bf16 %v730_v50, %v729_v49 }
 0x18f   : > { %v731_v54 = vpack.c.bf16 %v728_v52, %v727_v51 }
 0x191   : > { %1056 = vmatprep.mubr.msk.bf16.mxu1 %vm509_vm4, %v731_v54 }
 0x192   : > { %1057 = vmatmul.mubr.msk.bf16.vlgmr.msra.gmra.mrb[0].mxu1 %vm509_vm4, %v732_v53 }
 0x193   : > { %1061 = vmatpush3.bf16.msra.mxu1 %v1095_v55 }
 0x194   : > { %1062 = vmatprep.subr.bf16.mxu1 %v1096_v56 }
 0x197   : > { %1063 = vmatpush3.bf16.msra.mxu1 %v1096_v56 }
 0x265   : > { %v1058_v58 = vpop.f32.mrb[0].mxu1 }
 0x266   : > { %v797_v59 = vadd.f32 %v1058_v58, %v1006_v57  ;;  %v788_v60 = vpop.f32.mrb[1].mxu1 }
 0x267   : > { %v789_v61 = vadd.f32 %v1006_v57, %v788_v60  ;;  %v1059_v62 = vpop.f32.mrb[2].mxu1 }
 0x268   : > { %v800_v63 = vadd.f32 %v1059_v62, %v1006_v57  ;;  %v791_v0 = vpop.f32.mrb[3].mxu1  ;;  %v805_v2 = vmax.f32 %v797_v59, 0.0 }
 0x269   : > { %v792_v1 = vadd.f32 %v1006_v57, %v791_v0  ;;  %v803_v4 = vmax.f32 %v789_v61, 0.0 }
 0x26a   : > { %v806_v3 = vmax.f32 %v800_v63, 0.0 }
 0x26b   : > { %v804_v5 = vmax.f32 %v792_v1, 0.0 }
 0x26c   : > { %v808_v6 = vpack.c.bf16 %v806_v3, %v805_v2 }
 0x26d   : > { %v807_v7 = vpack.c.bf16 %v804_v5, %v803_v4 }
 0x26f   : > { %1064 = vmatprep.mubr.msk.bf16.mxu1 %vm656_vm9, %v807_v7 }
 0x270   : > { %1065 = vmatmul.mubr.msk.bf16.vlgmr.msra.gmra.mrb[4].mxu1 %vm656_vm9, %v808_v6 }
 0x343   : > { %v1066_v9 = vpop.f32.mrb[4].mxu1 }
 0x344   : > { %v872_v10 = vpop.f32.mrb[5].mxu1  ;;  %v881_v15 = vadd.f32 %v1066_v9, %v1010_v8 }
 0x345   : > { %v873_v11 = vadd.f32 %v1010_v8, %v872_v10  ;;  %v1067_v12 = vpop.f32.mrb[6].mxu1 }
 0x346   : > { %v875_v13 = vpop.f32.mrb[7].mxu1  ;;  %v884_v16 = vadd.f32 %v1067_v12, %v1010_v8  ;;  %890 = vst.msk [vmem:[%s434_s15 + $0x10] sm:$0xff] %vm887_vm10, %v881_v15 }
 0x347   : > { %888 = vst.msk [vmem:[%s434_s15] sm:$0xff] %vm887_vm10, %v873_v11  ;;  %v876_v14 = vadd.f32 %v1010_v8, %v875_v13 }
 0x348   : > { %891 = vst.msk [vmem:[%s434_s15 + $0x18] sm:$0xff] %vm887_vm10, %v884_v16 }
 0x349   : > { %889 = vst.msk [vmem:[%s434_s15 + $0x8] sm:$0xff] %vm887_vm10, %v876_v14 }
 0x34a PF: > { %s23_s19 = sadd.s32 1, %s1103_s19  }
 0x34b   : > { %p20_p4 = scmp.ge.s32.totalorder %s23_s19, 4  }
 0x34d   :  { %22 = sbr.rel (!%p20_p4) target bundleno = 3 (0x3), region = 100 }

</bundles_post_ra>
